<compile_context>
chip_gen: v6e
topology: v6e:2x2x1
jax: 0.10.0
libtpu: 0.0.40
codegen_flags: <defaults>
</compile_context>

<pallas_src>
import functools

import jax
import jax.numpy as jnp
from jax import lax
from jax.experimental import pallas as pl
from jax.experimental.pallas import tpu as pltpu

_MIB = 1024 * 1024
# Finite "minus infinity" for the running max: avoids inf - inf = NaN while
# still underflowing exp() to 0 against any real score.
_NEG_INF = -0.7 * float(jnp.finfo(jnp.float32).max)


# --------------------------------------------------------------------------- #
# Kernels
# --------------------------------------------------------------------------- #
def _make_single_pass_kernel(scale, has_mask, needs_weights):
    """Whole-S_kv-row kernel (needs_weights=True or small S_kv)."""

    def kernel(*refs):
        if has_mask:
            q_ref, k_ref, v_ref, m_ref = refs[:4]
            out_refs = refs[4:]
        else:
            q_ref, k_ref, v_ref = refs[:3]
            out_refs = refs[3:]
        attn_ref = out_refs[0]

        # Scale the queries (tq x K), not the (tq x S_kv) fp32 scores.
        q = q_ref[0] * jnp.asarray(scale, dtype=q_ref.dtype)
        k = k_ref[0]
        v = v_ref[0]

        # scores = q @ k^T, contracting the K dims directly (no XLU transpose).
        s = lax.dot_general(q, k, (((1,), (1,)), ((), ())),
                            preferred_element_type=jnp.float32)
        if has_mask:
            s = s + m_ref[0].astype(jnp.float32)

        s = s - jnp.max(s, axis=-1, keepdims=True)
        p = jnp.exp(s)
        denom = jnp.sum(p, axis=-1, keepdims=True)

        if needs_weights:
            # Exact divide: the normalized weights are returned to the caller.
            w = (p / denom).astype(attn_ref.dtype)
            out_refs[1][0] = w
            attn = jnp.dot(w, v, preferred_element_type=jnp.float32)
            attn_ref[0] = attn.astype(attn_ref.dtype)
        else:
            # Normalize the (tq, V) accumulator instead of the (tq, S_kv) probs.
            acc = jnp.dot(p.astype(v_ref.dtype), v,
                          preferred_element_type=jnp.float32)
            attn_ref[0] = (acc * pl.reciprocal(denom, approx=True)
                           ).astype(attn_ref.dtype)

    return kernel


def _make_flash_kernel(scale, has_mask, s_kv, tkv, kv_tail):
    """Online-softmax kernel tiling S_kv along the last ('arbitrary') grid axis."""

    def kernel(*refs):
        if has_mask:
            q_ref, k_ref, v_ref, mask_ref = refs[:4]
            o_ref, m_sc, l_sc, acc_sc = refs[4:]
        else:
            q_ref, k_ref, v_ref = refs[:3]
            o_ref, m_sc, l_sc, acc_sc = refs[3:]

        kv = pl.program_id(2)

        @pl.when(kv == 0)
        def _():
            m_sc[...] = jnp.full_like(m_sc, _NEG_INF)
            l_sc[...] = jnp.zeros_like(l_sc)
            acc_sc[...] = jnp.zeros_like(acc_sc)

        q = q_ref[0] * jnp.asarray(scale, dtype=q_ref.dtype)
        k = k_ref[0]
        v = v_ref[0]

        s = lax.dot_general(q, k, (((1,), (1,)), ((), ())),
                            preferred_element_type=jnp.float32)
        if has_mask:
            s = s + mask_ref[0].astype(jnp.float32)
        if kv_tail:
            # Ragged last KV tile: kill out-of-range columns and the garbage
            # V rows that pair with them (so 0 * garbage can't produce NaN).
            col = kv * tkv + lax.broadcasted_iota(jnp.int32, s.shape, 1)
            s = jnp.where(col < s_kv, s, -jnp.inf)
            row = kv * tkv + lax.broadcasted_iota(jnp.int32, (v.shape[0], 1), 0)
            v = jnp.where(row < s_kv, v, jnp.zeros_like(v))

        m_prev = m_sc[...]
        m_new = jnp.maximum(m_prev, jnp.max(s, axis=-1, keepdims=True))
        alpha = jnp.exp(m_prev - m_new)
        p = jnp.exp(s - m_new)
        l_sc[...] = alpha * l_sc[...] + jnp.sum(p, axis=-1, keepdims=True)
        acc_sc[...] = alpha * acc_sc[...] + jnp.dot(
            p.astype(v.dtype), v, preferred_element_type=jnp.float32)
        m_sc[...] = m_new

        @pl.when(kv == pl.num_programs(2) - 1)
        def _():
            o_ref[0] = (acc_sc[...] * pl.reciprocal(l_sc[...], approx=True)
                        ).astype(o_ref.dtype)

    return kernel


# --------------------------------------------------------------------------- #
# Tiling / budget helpers
# --------------------------------------------------------------------------- #
def _vmem_capacity_bytes():
    try:
        return int(pltpu.get_tpu_info().vmem_capacity_bytes)
    except Exception:
        return 64 * _MIB   # conservative (v7x-sized) fallback


def _largest_divisor_tile(n, cap):
    """Largest t <= cap with t % 8 == 0 and n % t == 0 (or n itself if n <= cap)."""
    if n <= cap:
        return n
    t = (min(cap, n) // 8) * 8
    while t >= 8:
        if n % t == 0:
            return t
        t -= 8
    return None


def _pick_q_tiling(s, cap):
    """Return (s_padded, tq): tq divides s_padded; pad S only when unavoidable."""
    t = _largest_divisor_tile(s, cap)
    if t is not None:
        return s, t
    s_pad = -(-s // 128) * 128          # next multiple of 128
    for cand in (512, 256, 128):
        if cand <= cap and s_pad % cand == 0:
            return s_pad, cand
    return s_pad, 128


def _pick_kv_tile(s_kv, cap):
    for cand in (512, 256, 128):
        if cand <= cap and s_kv % cand == 0:
            return cand
    return min(cap, 512)                # lane-aligned; ragged tail masked in-kernel


# --------------------------------------------------------------------------- #
# Wrapper
# --------------------------------------------------------------------------- #
@functools.partial(jax.jit, static_argnames=("needs_weights",))
def torch_sdpa_pallas(queries, keys, values, mask=None, needs_weights=False):
    """Pallas TPU implementation of TorchSDPA.forward (eval mode, dropout_p=0)."""
    N, S, K = queries.shape
    S_kv = keys.shape[1]
    V = values.shape[-1]
    dtype = queries.dtype
    dtb = queries.dtype.itemsize
    has_mask = mask is not None

    if has_mask:
        if mask.dtype == jnp.bool_:
            raise ValueError("TorchSDPA expects a float additive mask, got bool.")
        if mask.ndim == 2:
            mask = mask[None]           # (1, S, S_kv): reused across the batch axis
        # torch.baddbmm adds the mask in the queries' dtype; storing it in that
        # dtype also halves mask DMA / VMEM footprint for bf16 models.
        mask = mask.astype(dtype)

    vmem_cap = _vmem_capacity_bytes()
    budget = int(vmem_cap * 0.6)                       # headroom for 2x buffering etc.
    vmem_limit = int(min(vmem_cap * 0.85, 112 * _MIB))

    use_flash = (not needs_weights) and S_kv >= 1024
    scale = float(K) ** -0.5

    if use_flash:
        # ---- flash / online-softmax path --------------------------------- #
        tq_cap, tkv_cap = 512, 512

        def flash_live(tq, tkv):
            itm = 4 * tq * tkv * 4                         # s / p / temporaries
            scr = tq * (V + 16) * 4                        # acc + m + l scratch
            io = 2 * tq * (K + V) * dtb + 4 * tkv * (K + V) * dtb
            msk = 2 * tq * tkv * dtb if has_mask else 0
            return itm + scr + io + msk

        while flash_live(tq_cap, tkv_cap) > budget and (tq_cap > 128 or tkv_cap > 128):
            if tkv_cap >= tq_cap and tkv_cap > 128:
                tkv_cap //= 2
            else:
                tq_cap //= 2

        s_pad, tq = _pick_q_tiling(S, tq_cap)
        tkv = _pick_kv_tile(S_kv, tkv_cap)
        kv_tail = (S_kv % tkv) != 0
        n_kv = pl.cdiv(S_kv, tkv)

        if s_pad != S:
            queries = jnp.pad(queries, ((0, 0), (0, s_pad - S), (0, 0)))
            if has_mask:
                mask = jnp.pad(mask, ((0, 0), (0, s_pad - S), (0, 0)))

        grid = (N, s_pad // tq, n_kv)
        in_specs = [
            pl.BlockSpec((1, tq, K), lambda b, qi, kv: (b, qi, 0)),
            pl.BlockSpec((1, tkv, K), lambda b, qi, kv: (b, kv, 0)),
            pl.BlockSpec((1, tkv, V), lambda b, qi, kv: (b, kv, 0)),
        ]
        inputs = (queries, keys, values)
        if has_mask:
            if mask.shape[0] == 1:
                mmap = lambda b, qi, kv: (0, qi, kv)       # resident across batch
            else:
                mmap = lambda b, qi, kv: (b, qi, kv)
            in_specs.append(pl.BlockSpec((1, tq, tkv), mmap))
            inputs = inputs + (mask,)

        out_shape = jax.ShapeDtypeStruct((N, s_pad, V), dtype)
        out_specs = pl.BlockSpec((1, tq, V), lambda b, qi, kv: (b, qi, 0))
        scratch = [
            pltpu.VMEM((tq, 1), jnp.float32),              # running max m
            pltpu.VMEM((tq, 1), jnp.float32),              # running sum  l
            pltpu.VMEM((tq, V), jnp.float32),              # output accumulator
        ]
        kernel = _make_flash_kernel(scale, has_mask, S_kv, tkv, kv_tail)
        sems = ("parallel", "parallel", "arbitrary")
    else:
        # ---- single-pass path (needs_weights or small S_kv) --------------- #
        def sp_live(tq):
            per_row = 3 * S_kv * 4 + 2 * (K + V) * dtb
            if has_mask:
                per_row += 2 * S_kv * dtb
            if needs_weights:
                per_row += 3 * S_kv * dtb
            return tq * per_row + 4 * S_kv * (K + V) * dtb

        tq_cap = 512
        while tq_cap > 128 and sp_live(tq_cap) > budget:
            tq_cap //= 2

        s_pad, tq = _pick_q_tiling(S, tq_cap)
        if s_pad != S:
            queries = jnp.pad(queries, ((0, 0), (0, s_pad - S), (0, 0)))
            if has_mask:
                mask = jnp.pad(mask, ((0, 0), (0, s_pad - S), (0, 0)))

        grid = (N, s_pad // tq)
        in_specs = [
            pl.BlockSpec((1, tq, K), lambda b, qi: (b, qi, 0)),
            pl.BlockSpec((1, S_kv, K), lambda b, qi: (b, 0, 0)),
            pl.BlockSpec((1, S_kv, V), lambda b, qi: (b, 0, 0)),
        ]
        inputs = (queries, keys, values)
        if has_mask:
            if mask.shape[0] == 1:
                mmap = lambda b, qi: (0, qi, 0)
            else:
                mmap = lambda b, qi: (b, qi, 0)
            in_specs.append(pl.BlockSpec((1, tq, S_kv), mmap))
            inputs = inputs + (mask,)

        attn_spec = pl.BlockSpec((1, tq, V), lambda b, qi: (b, qi, 0))
        if needs_weights:
            out_shape = (jax.ShapeDtypeStruct((N, s_pad, V), dtype),
                         jax.ShapeDtypeStruct((N, s_pad, S_kv), dtype))
            out_specs = (attn_spec,
                         pl.BlockSpec((1, tq, S_kv), lambda b, qi: (b, qi, 0)))
        else:
            out_shape = jax.ShapeDtypeStruct((N, s_pad, V), dtype)
            out_specs = attn_spec
        scratch = []
        kernel = _make_single_pass_kernel(scale, has_mask, needs_weights)
        sems = ("parallel", "parallel")

    flops = 2 * N * S * S_kv * (K + V)
    bytes_accessed = (queries.size + keys.size + values.size + N * S * V) * dtb
    if has_mask:
        bytes_accessed += mask.size * mask.dtype.itemsize
    if needs_weights:
        bytes_accessed += N * S * S_kv * dtb
    cost = pl.CostEstimate(flops=int(flops), transcendentals=int(N * S * S_kv),
                           bytes_accessed=int(bytes_accessed))

    grid_spec = pltpu.PrefetchScalarGridSpec(
        num_scalar_prefetch=0, grid=grid,
        in_specs=in_specs, out_specs=out_specs, scratch_shapes=scratch)

    outs = pl.pallas_call(
        kernel,
        out_shape=out_shape,
        grid_spec=grid_spec,
        cost_estimate=cost,
        compiler_params=pltpu.CompilerParams(
            dimension_semantics=sems, vmem_limit_bytes=vmem_limit),
    )(*inputs)

    if needs_weights:
        attn, attn_w = outs
        if s_pad != S:
            attn, attn_w = attn[:, :S], attn_w[:, :S]
        return attn, attn_w
    attn = outs
    if s_pad != S:
        attn = attn[:, :S]
    return attn, None


# --------------------------------------------------------------------------- #
# Pure-JAX reference (mirrors _naive_scaled_dot_product_attention)
# --------------------------------------------------------------------------- #
def _reference(queries, keys, values, mask):
    scale = queries.shape[-1] ** -0.5
    q = (queries * jnp.asarray(scale, queries.dtype)).astype(jnp.float32)
    s = jnp.einsum("bsk,btk->bst", q, keys.astype(jnp.float32))
    if mask is not None:
        m = mask.astype(queries.dtype).astype(jnp.float32)
        if m.ndim == 2:
            m = m[None]
        s = s + m
    w = jax.nn.softmax(s, axis=-1)
    w = w.astype(queries.dtype)
    attn = jnp.einsum("bst,btv->bsv", w.astype(jnp.float32),
                      values.astype(jnp.float32)).astype(queries.dtype)
    return attn, w


if __name__ == "__main__":
    key = jax.random.PRNGKey(0)
    kq, kk, kv, km = jax.random.split(key, 4)

    # ---- small shapes: single-pass path ------------------------------------
    N, S, S_kv, K, V = 2, 8, 8, 32, 32
    queries = jax.random.normal(kq, (N, S, K), dtype=jnp.float32)
    keys = jax.random.normal(kk, (N, S_kv, K), dtype=jnp.float32)
    values = jax.random.normal(kv, (N, S_kv, V), dtype=jnp.float32)
    mask = jax.random.normal(km, (S, S_kv), dtype=jnp.float32)

    # 1) fp32, 2-D mask broadcast over batch, needs_weights=True
    attn, attn_w = torch_sdpa_pallas(queries, keys, values, mask,
                                     needs_weights=True)
    jax.block_until_ready(attn)
    ref_attn, ref_w = _reference(queries, keys, values, mask)
    assert attn.shape == (N, S, V) and attn.dtype == queries.dtype
    assert attn_w.shape == (N, S, S_kv) and attn_w.dtype == queries.dtype
    assert jnp.allclose(attn, ref_attn, atol=2e-2, rtol=2e-2)
    assert jnp.allclose(attn_w, ref_w, atol=2e-2, rtol=2e-2)

    # 2) mask=None, needs_weights=False
    attn2, w2 = torch_sdpa_pallas(queries, keys, values, None,
                                  needs_weights=False)
    jax.block_until_ready(attn2)
    assert w2 is None
    ref_attn2, _ = _reference(queries, keys, values, None)
    assert jnp.allclose(attn2, ref_attn2, atol=2e-2, rtol=2e-2)

    # 3) bf16 inputs with a per-batch 3-D mask, needs_weights=True
    q_bf, k_bf, v_bf = (x.astype(jnp.bfloat16) for x in (queries, keys, values))
    mask3 = jax.random.normal(km, (N, S, S_kv), dtype=jnp.float32)
    attn3, w3 = torch_sdpa_pallas(q_bf, k_bf, v_bf, mask3, needs_weights=True)
    jax.block_until_ready(attn3)
    ref_attn3, ref_w3 = _reference(q_bf, k_bf, v_bf, mask3)
    assert attn3.dtype == jnp.bfloat16 and w3.dtype == jnp.bfloat16
    assert jnp.allclose(attn3.astype(jnp.float32), ref_attn3.astype(jnp.float32),
                        atol=5e-2, rtol=5e-2)
    assert jnp.allclose(w3.astype(jnp.float32), ref_w3.astype(jnp.float32),
                        atol=5e-2, rtol=5e-2)

    # ---- larger S_kv: flash (online-softmax) path ---------------------------
    Nf, Sf, Skvf, Kf, Vf = 2, 128, 1024, 64, 64
    kq2, kk2, kv2, km2 = jax.random.split(jax.random.PRNGKey(0), 4)
    qf = jax.random.normal(kq2, (Nf, Sf, Kf), dtype=jnp.float32)
    kf = jax.random.normal(kk2, (Nf, Skvf, Kf), dtype=jnp.float32)
    vf = jax.random.normal(kv2, (Nf, Skvf, Vf), dtype=jnp.float32)
    mf = jax.random.normal(km2, (Sf, Skvf), dtype=jnp.float32)

    # 4) fp32, no mask, needs_weights=False  -> flash path
    attn4, w4 = torch_sdpa_pallas(qf, kf, vf, None, needs_weights=False)
    jax.block_until_ready(attn4)
    assert w4 is None
    ref_attn4, _ = _reference(qf, kf, vf, None)
    assert jnp.allclose(attn4, ref_attn4, atol=2e-2, rtol=2e-2)

    # 5) bf16, 2-D mask, needs_weights=False -> flash path with mask
    attn5, _ = torch_sdpa_pallas(qf.astype(jnp.bfloat16), kf.astype(jnp.bfloat16),
                                 vf.astype(jnp.bfloat16), mf, needs_weights=False)
    jax.block_until_ready(attn5)
    ref_attn5, _ = _reference(qf.astype(jnp.bfloat16), kf.astype(jnp.bfloat16),
                              vf.astype(jnp.bfloat16), mf)
    assert jnp.allclose(attn5.astype(jnp.float32), ref_attn5.astype(jnp.float32),
                        atol=5e-2, rtol=5e-2)

    print("KERNEL_OK")
</pallas_src>

<mosaic_0001>
module attributes {stable_mosaic.version = 11 : i64} {
  func.func @kernel(%arg0: i32, %arg1: i32, %arg2: memref<1x8x32xf32, #tpu.memory_space<vmem>>, %arg3: memref<1x8x32xf32, #tpu.memory_space<vmem>>, %arg4: memref<1x8x32xf32, #tpu.memory_space<vmem>>, %arg5: memref<1x8x8xf32, #tpu.memory_space<vmem>>, %arg6: memref<1x8x32xf32, #tpu.memory_space<vmem>>, %arg7: memref<1x8x8xf32, #tpu.memory_space<vmem>>) attributes {dimension_semantics = [#tpu.dimension_semantics<parallel>, #tpu.dimension_semantics<parallel>], iteration_bounds = array<i64: 2, 1>, scalar_prefetch = 0 : i64, scratch_operands = 0 : i64, tpu.core_type = #tpu.core_type<tc>, window_params = [{transform_indices = @transform_0, window_bounds = array<i64: 1, 8, 32>}, {transform_indices = @transform_1, window_bounds = array<i64: 1, 8, 32>}, {transform_indices = @transform_2, window_bounds = array<i64: 1, 8, 32>}, {transform_indices = @transform_3, window_bounds = array<i64: 1, 8, 8>}, {transform_indices = @transform_4, window_bounds = array<i64: 1, 8, 32>}, {transform_indices = @transform_5, window_bounds = array<i64: 1, 8, 8>}]} {
    %c0 = arith.constant 0 : index
    %c0_0 = arith.constant 0 : index
    %c0_1 = arith.constant 0 : index
    %0 = vector.load %arg2[%c0, %c0_0, %c0_1] : memref<1x8x32xf32, #tpu.memory_space<vmem>>, vector<1x8x32xf32>
    %1 = vector.shape_cast %0 : vector<1x8x32xf32> to vector<8x32xf32>
    %cst = arith.constant 0.176776692 : f32
    %2 = vector.broadcast %cst : f32 to vector<8x32xf32>
    %3 = arith.mulf %1, %2 : vector<8x32xf32>
    %c0_2 = arith.constant 0 : index
    %c0_3 = arith.constant 0 : index
    %c0_4 = arith.constant 0 : index
    %4 = vector.load %arg3[%c0_2, %c0_3, %c0_4] : memref<1x8x32xf32, #tpu.memory_space<vmem>>, vector<1x8x32xf32>
    %5 = vector.shape_cast %4 : vector<1x8x32xf32> to vector<8x32xf32>
    %c0_5 = arith.constant 0 : index
    %c0_6 = arith.constant 0 : index
    %c0_7 = arith.constant 0 : index
    %6 = vector.load %arg4[%c0_5, %c0_6, %c0_7] : memref<1x8x32xf32, #tpu.memory_space<vmem>>, vector<1x8x32xf32>
    %7 = vector.shape_cast %6 : vector<1x8x32xf32> to vector<8x32xf32>
    %cst_8 = arith.constant dense<0.000000e+00> : vector<8x8xf32>
    %8 = tpu.matmul %3, %5, %cst_8 {dimension_numbers = #tpu.dot_dimension_numbers<[1], [1], [0], [0], [0, 0, 1, 0], [], []>} : vector<8x32xf32>, vector<8x32xf32>, vector<8x8xf32> -> vector<8x8xf32>
    %c0_9 = arith.constant 0 : index
    %c0_10 = arith.constant 0 : index
    %c0_11 = arith.constant 0 : index
    %9 = vector.load %arg5[%c0_9, %c0_10, %c0_11] : memref<1x8x8xf32, #tpu.memory_space<vmem>>, vector<1x8x8xf32>
    %10 = vector.shape_cast %9 : vector<1x8x8xf32> to vector<8x8xf32>
    %11 = arith.addf %8, %10 : vector<8x8xf32>
    %cst_12 = arith.constant dense<0xFF800000> : vector<8xf32>
    %12 = vector.multi_reduction <maximumf>, %11, %cst_12 [1] : vector<8x8xf32> to vector<8xf32>
    %13 = vector.shape_cast %12 : vector<8xf32> to vector<8x1xf32>
    %14 = vector.broadcast %13 : vector<8x1xf32> to vector<8x8xf32>
    %15 = arith.subf %11, %14 : vector<8x8xf32>
    %16 = math.exp %15 : vector<8x8xf32>
    %cst_13 = arith.constant dense<0.000000e+00> : vector<8xf32>
    %17 = vector.multi_reduction <add>, %16, %cst_13 [1] : vector<8x8xf32> to vector<8xf32>
    %18 = vector.shape_cast %17 : vector<8xf32> to vector<8x1xf32>
    %19 = vector.broadcast %18 : vector<8x1xf32> to vector<8x8xf32>
    %20 = arith.divf %16, %19 : vector<8x8xf32>
    %c0_14 = arith.constant 0 : index
    %c0_15 = arith.constant 0 : index
    %c0_16 = arith.constant 0 : index
    %21 = vector.load %arg7[%c0_14, %c0_15, %c0_16] : memref<1x8x8xf32, #tpu.memory_space<vmem>>, vector<1x8x8xf32>
    %22 = vector.shape_cast %21 : vector<1x8x8xf32> to vector<8x8xf32>
    %23 = vector.shape_cast %20 : vector<8x8xf32> to vector<1x8x8xf32>
    tpu.vector_store %arg7[%c0_14, %c0_15, %c0_16], %23 {strides = array<i32>} : memref<1x8x8xf32, #tpu.memory_space<vmem>>, vector<1x8x8xf32>,
    %cst_17 = arith.constant dense<0.000000e+00> : vector<8x32xf32>
    %24 = tpu.matmul %20, %7, %cst_17 {dimension_numbers = #tpu.dot_dimension_numbers<[1], [0], [0], [1], [0, 0, 1, 1], [], []>} : vector<8x8xf32>, vector<8x32xf32>, vector<8x32xf32> -> vector<8x32xf32>
    %c0_18 = arith.constant 0 : index
    %c0_19 = arith.constant 0 : index
    %c0_20 = arith.constant 0 : index
    %25 = vector.load %arg6[%c0_18, %c0_19, %c0_20] : memref<1x8x32xf32, #tpu.memory_space<vmem>>, vector<1x8x32xf32>
    %26 = vector.shape_cast %25 : vector<1x8x32xf32> to vector<8x32xf32>
    %27 = vector.shape_cast %24 : vector<8x32xf32> to vector<1x8x32xf32>
    tpu.vector_store %arg6[%c0_18, %c0_19, %c0_20], %27 {strides = array<i32>} : memref<1x8x32xf32, #tpu.memory_space<vmem>>, vector<1x8x32xf32>,
    return
  }
  func.func @transform_0(%arg0: i32, %arg1: i32) -> (i32, i32, i32) {
    %c0_i32 = arith.constant 0 : i32
    %c0_i32_0 = arith.constant 0 : i32
    return %arg0, %arg1, %c0_i32 : i32, i32, i32
  }
  func.func @transform_1(%arg0: i32, %arg1: i32) -> (i32, i32, i32) {
    %c0_i32 = arith.constant 0 : i32
    %c0_i32_0 = arith.constant 0 : i32
    %c0_i32_1 = arith.constant 0 : i32
    return %arg0, %c0_i32, %c0_i32_0 : i32, i32, i32
  }
  func.func @transform_2(%arg0: i32, %arg1: i32) -> (i32, i32, i32) {
    %c0_i32 = arith.constant 0 : i32
    %c0_i32_0 = arith.constant 0 : i32
    %c0_i32_1 = arith.constant 0 : i32
    return %arg0, %c0_i32, %c0_i32_0 : i32, i32, i32
  }
  func.func @transform_3(%arg0: i32, %arg1: i32) -> (i32, i32, i32) {
    %c0_i32 = arith.constant 0 : i32
    %c0_i32_0 = arith.constant 0 : i32
    %c0_i32_1 = arith.constant 0 : i32
    return %c0_i32, %arg1, %c0_i32_0 : i32, i32, i32
  }
  func.func @transform_4(%arg0: i32, %arg1: i32) -> (i32, i32, i32) {
    %c0_i32 = arith.constant 0 : i32
    %c0_i32_0 = arith.constant 0 : i32
    return %arg0, %arg1, %c0_i32 : i32, i32, i32
  }
  func.func @transform_5(%arg0: i32, %arg1: i32) -> (i32, i32, i32) {
    %c0_i32 = arith.constant 0 : i32
    %c0_i32_0 = arith.constant 0 : i32
    return %arg0, %arg1, %c0_i32 : i32, i32, i32
  }
}

</mosaic_0001>

<bundles_post_ra>
// kernel: torch_sdpa_pallas.1
= control target key start
LH: loop header
LB: loop body
LE: loop exit
PB: predicated region body
PF: predicated region fallthrough
CT: control target
= control target key end

     0   :  { %s1392_s0 = inlined_call_operand.hbm [shape: f32[2,8,32], index: 0, kind: input, shape index: {}]   ;;  %s1393_s1 = inlined_call_operand.hbm [shape: f32[2,8,32], index: 1, kind: input, shape index: {}]   ;;  %s1394_s2 = inlined_call_operand.hbm [shape: f32[2,8,32], index: 2, kind: input, shape index: {}]   ;;  %s1395_s3 = inlined_call_operand.hbm [shape: f32[1,8,8], index: 3, kind: input, shape index: {}]   ;;  %s1396_s4 = inlined_call_operand.hbm [shape: f32[2,8,32], index: 4, kind: output, shape index: {0}]   ;;  %s1397_s5 = inlined_call_operand.hbm [shape: f32[2,8,8], index: 5, kind: output, shape index: {1}]  }
   0x1   :  { %1406 = sst [smem:[#allocation21_spill]] %s1393_s1 }
   0x2   :  { %11 = vsyncpa [#allocation3], 0 }
   0x3   :  { %13 = vsyncpa [#allocation3 + $0x1], 0 }
   0x4   :  { %14 = vsyncpa [#allocation6], 0 }
   0x5   :  { %16 = vsyncpa [#allocation6 + $0x1], 0 }
   0x6   :  { %17 = vsyncpa [#allocation9], 0 }
   0x7   :  { %18 = vsyncpa [#allocation4], 0 }
   0x8   :  { %20 = vsyncpa [#allocation4 + $0x1], 0 }
   0x9   :  { %21 = vsyncpa [#allocation12], 0 }
   0xa   :  { %23 = vsyncpa [#allocation12 + $0x1], 0  ;;  %s1135_s18 = smov 0   ;;  %s1137_s19 = smov 0  }
   0xb   :  { %s1139_s20 = smov 0   ;;  %s1141_s21 = smov 0  }
   0xc   :  { %s1143_s22 = smov 0   ;;  %s1145_s23 = smov 0  }
   0xd LB: > { %1407 = sst [smem:[#allocation18_spill]] %s1091_s22  ;;  %s41_s24 = sadd.s32 1, %s1091_s22  ;;  %s1095_s23 = sphi %s1145_s23, %s29_s23   ;;  %s1091_s22 = sphi %s1143_s22, %s1428_s22   ;;  %s1087_s21 = sphi %s1141_s21, %s1427_s21   ;;  %s1083_s20 = sphi %s1139_s20, %s1431_s20   ;;  %s1079_s19 = sphi %s1137_s19, %s1430_s19   ;;  %s1075_s18 = sphi %s1135_s18, %s1429_s18  }
   0xe   : > { %s50_s25 = sadd.s32 1, %s1083_s20  ;;  %p43_p0 = scmp.ge.s32.totalorder %s41_s24, 2 }
   0xf   : > { %p57_p1 = scmp.ne.s32.totalorder %s1083_s20, %s1079_s19  ;;  %p58_p2 = scmp.eq.s32.totalorder %s1095_s23, 0 }
  0x10   : > { %s1433_s24 = smov (%p43_p0, %s41_s24), 0  ;;  %p809_p5 = scmp.lt.s32.totalorder %s1095_s23, 2 }
  0x11   : > { %1408 = sst [smem:[#allocation19_spill]] %s1433_s24  ;;  %p59_p4 = por %p58_p2, %p57_p1 }
  0x12   : > { %s45_s26 = ssub.s32 %s1091_s22, %s1433_s24  ;;  %s1398_s27 = sand.u32 1, %s1083_s20  }
  0x13   : > { %p48_p6 = scmp.eq.s32.totalorder %s45_s26, 0  ;;  %s1182_s28 = sshll.u32 %s1398_s27, 3 }
  0x14   : > { %s1185_s29 = sshll.u32 %s1091_s22, 7  ;;  %p1187_p7 = pnand %p809_p5, %p59_p4 }
  0x15   : > { %s1192_s6 = scalar_select %p48_p6, %s1083_s20, %s50_s25  }
  0x16   : > { %s253_s7 = sand.u32 1, %s1095_s23   ;;  %s1411_s1 = sld [smem:[#allocation21_spill]] }
  0x17   : > { %1410 = sst [smem:[#allocation20_spill]] %s1192_s6  ;;  %s257_s11 = scalar_lea.vmem [#allocation5], %s1182_s28 }
  0x18   : > { %s264_s12 = sshll.u32 %s257_s11, 4  ;;  %s1200_s13 = scalar_lea.sflag [#allocation6], %s253_s7  ;;  %s265_s12 = int_to_ptr.vmem [resolvable:$true] %s264_s12 }
  0x19   : > { %p1402_p8 = pneg %p1187_p7  ;;  %s880_s14 = scalar_lea.vmem %s265_s12, 128 }
  0x1a   : > { %p881_p9 = scmp.ne.s32.totalorder %s265_s12, %s880_s14  ;;  %s1097_s15 = smov [#allocation5]  }
  0x1b   : > { %s885_s16 = sshll.u32 %s1097_s15, 4  ;;  %s886_s16 = int_to_ptr.vmem [resolvable:$false] %s885_s16 }
  0x1c   : > { %s262_s10 = scalar_lea.hbm %s1411_s1, %s1185_s29  ;;  %p883_p10 = pnand %p881_p9, %p1402_p8 }
  0x1d   : > { %s887_s17 = scalar_lea.vmem %s886_s16, 256  ;;  %p888_p12 = scmp.lt.s32.totalorder %s265_s12, %s886_s16 }
  0x1e   : > { %p884_p11 = pneg %p883_p10  ;;  %p889_p13 = scmp.lt.s32.totalorder %s887_s17, %s880_s14 }
  0x20   : > { %p890_p0 = por %p889_p13, %p888_p12 }
  0x22   : > { %p891_p2 = pnand %p890_p0, %p884_p11 }
  0x24   : > { %894 = shalt.err (!%p891_p2)
}
  0x25   : > { %797 = dma.hbm_to_vmem [thread:$0]  (!%p1187_p7), %s262_s10, 128, %s265_s12, %s1200_s13  }
  0x26   : > { %s1211_s25 = sadd.s32 4294967295, %s1095_s23   ;;  %s733_s26 = sadd.s32 4294967294, %s1095_s23  }
  0x27   : > { %p63_p4 = scmp.ne.s32.totalorder %s1079_s19, %s1075_s18  ;;  %p1401_p5 = scmp.eq.s32.totalorder %s1211_s25, 0 }
  0x28   : > { %p167_p6 = scmp.eq.s32.totalorder %s1211_s25, 1  ;;  %p173_p9 = scmp.eq.s32.totalorder %s733_s26, 1 }
  0x29   : > { %p734_p10 = scmp.ge.s32.totalorder %s1095_s23, 1  ;;  %p1221_p11 = por %p1401_p5, %p63_p4 }
  0x2a   : > { %p1228_p12 = por %p167_p6, %p57_p1  ;;  %p1232_p13 = por %p173_p9, %p63_p4 }
  0x2b   : > { %s1412_s7 = scalar_select %p1221_p11, 1, 0 }
  0x2c   : > { %s1413_s8 = scalar_select %p1228_p12, 1, 0 }
  0x2d   : > { %s1414_s9 = scalar_select %p1232_p13, 1, 0 }
  0x2e   : > { %p208_p0 = scmp.lt.s32.totalorder %s1095_s23, 3  ;;  %s1098_s11 = smov [#allocation8]  }
  0x2f   : > { %s223_s12 = sshll.u32 %s1098_s11, 4  ;;  %s244_s16 = scalar_lea.hbm %s1392_s0, %s1185_s29  ;;  %s1241_s12 = int_to_ptr.vmem [resolvable:$true] %s223_s12 }
  0x30   : > { %p1237_p2 = pnand %p734_p10, %p208_p0  ;;  %s238_s17 = scalar_lea.vmem [#allocation2], %s1182_s28 }
  0x31   : > { %s246_s26 = sshll.u32 %s238_s17, 4  ;;  %s1417_s1 = sand.u32 1, %s1083_s20   ;;  %s247_s26 = int_to_ptr.vmem [resolvable:$true] %s246_s26 }
  0x32   : > { %s1415_s10 = scalar_select %p1237_p2, 1, 0 }
  0x33   : > { %p787_p1 = pneg %p1237_p2  ;;  %s235_s24 = scalar_lea.sflag [#allocation3], %s1417_s1 }
  0x34   : > { %s908_s22 = scalar_lea.vmem %s247_s26, 128  ;;  %s1099_s11 = smov [#allocation2]  }
  0x35   : > { %p1252_p4 = pnand %p787_p1, %p1401_p5  ;;  %p909_p6 = scmp.ne.s32.totalorder %s247_s26, %s908_s22 }
  0x36   : > { %s913_s6 = sshll.u32 %s1099_s11, 4  ;;  %s914_s6 = int_to_ptr.vmem [resolvable:$false] %s913_s6 }
  0x37   : > { %p911_p9 = pnand %p909_p6, %p1402_p8  ;;  %s915_s14 = scalar_lea.vmem %s914_s6, 256 }
  0x38   : > { %p916_p0 = scmp.lt.s32.totalorder %s247_s26, %s914_s6  ;;  %p917_p3 = scmp.lt.s32.totalorder %s915_s14, %s908_s22 }
  0x39   : > { %p912_p10 = pneg %p911_p9 }
  0x3a   : > { %p918_p13 = por %p917_p3, %p916_p0 }
  0x3c   : > { %p919_p1 = pnand %p918_p13, %p912_p10 }
  0x3e   : > { %922 = shalt.err (!%p919_p1)
}
  0x3f   : > { %794 = dma.hbm_to_vmem [thread:$0]  (!%p1187_p7), %s244_s16, 128, %s247_s26, %s235_s24  }
  0x40   : > { %p925_p5 = pneg %p1252_p4  ;;  %s934_s1 = scalar_lea.vmem %s1241_s12, 128 }
  0x41   : > { %p935_p6 = scmp.ne.s32.totalorder %s1241_s12, %s934_s1  ;;  %p942_p12 = scmp.lt.s32.totalorder %s1241_s12, %s1241_s12 }
  0x42   : > { %p943_p11 = scmp.lt.s32.totalorder %s934_s1, %s934_s1 }
  0x43   : > { %p937_p9 = pnand %p935_p6, %p925_p5 }
  0x44   : > { %p944_p2 = por %p943_p11, %p942_p12 }
  0x45   : > { %p938_p8 = pneg %p937_p9 }
  0x47   : > { %p945_p3 = pnand %p944_p2, %p938_p8 }
  0x49   : > { %948 = shalt.err (!%p945_p3)
}
  0x4a   : > { %790 = dma.hbm_to_vmem [thread:$0]  (!%p1252_p4), %s1395_s3, 128, %s1241_s12, [#allocation9]  }
  0x4b   : > { %s280_s16 = scalar_lea.hbm %s1394_s2, %s1185_s29  ;;  %s275_s17 = scalar_lea.vmem [#allocation7], %s1182_s28 }
  0x4c   : > { %s282_s26 = sshll.u32 %s275_s17, 4  ;;  %p1418_p5 = pneg %p1187_p7  ;;  %s283_s26 = int_to_ptr.vmem [resolvable:$true] %s282_s26 }
  0x4d   : > { %s962_s11 = scalar_lea.vmem %s283_s26, 128  ;;  %s1100_s27 = smov [#allocation7]  }
  0x4e   : > { %p963_p8 = scmp.ne.s32.totalorder %s283_s26, %s962_s11  ;;  %s967_s14 = sshll.u32 %s1100_s27, 4  ;;  %s968_s14 = int_to_ptr.vmem [resolvable:$false] %s967_s14 }
  0x4f   : > { %s969_s1 = scalar_lea.vmem %s968_s14, 256  ;;  %p970_p13 = scmp.lt.s32.totalorder %s283_s26, %s968_s14 }
  0x50   : > { %p965_p11 = pnand %p963_p8, %p1418_p5  ;;  %p971_p2 = scmp.lt.s32.totalorder %s969_s1, %s962_s11 }
  0x52   : > { %p966_p12 = pneg %p965_p11  ;;  %p972_p4 = por %p971_p2, %p970_p13 }
  0x54   : > { %p973_p10 = pnand %p972_p4, %p966_p12 }
  0x56   : > { %976 = shalt.err (!%p973_p10)
}
  0x57   : > { %800 = dma.hbm_to_vmem [thread:$0]  (!%p1187_p7), %s280_s16, 128, %s283_s26, %s1200_s13  }
  0x58   : > { %p1419_p0 = scmp.ne.s32.totalorder %s1415_s10, 0 }
  0x59   : > { %s1289_s28 = sand.u32 (!%p1419_p0), 1, %s1079_s19   ;;  %p1420_p1 = scmp.ne.s32.totalorder (!%p1419_p0), %s1412_s7, 0 }
  0x5a   : > { %291 = sbr.rel (%p1419_p0) target bundleno = 822 (0x336), region = 36  ;;  %s1292_s29 = sshll.u32 (!%p1419_p0), %s1289_s28, 3 }
  0x5b   : > { %s294_s12 = scalar_lea.sflag (!%p1419_p0), [#allocation3], %s1289_s28  ;;  %s297_s22 = scalar_lea.vmem (!%p1419_p0), [#allocation2], %s1292_s29 }
  0x5f   : > { %1054 = dma.done.wait (%p1420_p1), %s294_s12, 128  }
  0x60   : > { %1056 = vsyncadd (%p1420_p1), %s294_s12, 4294967168  ;;  %s302_s30 = sand.u32 1, %s1211_s25   ;;  %s306_s10 = scalar_lea.vmem [#allocation5], %s1292_s29 }
  0x61   : > { %s303_s13 = scalar_lea.sflag [#allocation6], %s302_s30 }
  0x62   : > { %1058 = dma.done.wait (%p1420_p1), %s303_s13, 256  }
  0x63   : > { %1060 = vsyncadd (%p1420_p1), %s303_s13, 4294967040  ;;  %s315_s6 = scalar_lea.vmem [#allocation7], %s1292_s29  ;;  %p1421_p7 = scmp.eq.s32.totalorder %s1211_s25, 0 }
  0x65   : > { %1062 = dma.done.wait (%p1421_p7), [#allocation9], 128   ;;  %p1422_p6 = pmov %p1421_p7 }
  0x66   : > { %v1101_v0 = vmov 0.0   ;;  %vm1102_vm0 = vmmov 0   ;;  %vm366_vm1 = vcmask 261120   ;;  %v363_v1 = vld [vmem:[%s306_s10] sm:$0xff]  ;;  %v361_v2 = vld [vmem:[%s297_s22] sm:$0xff]  ;;  %vm443_vm2 = vcmask 64512  }
  0x67   : > { %1064 = vsyncadd (%p1422_p6), [#allocation9], 4294967168  ;;  %763 = vmatprep.subr.mxu0 %v1101_v0  ;;  %765 = vmatprep.mubr.msk.f32.mxu0 %vm1102_vm0, %v1101_v0  ;;  %v362_v3 = vmul.f32 0.17677669, %v361_v2  ;;  %v365_v4 = vld [vmem:[#allocation8] sm:$0xff]  ;;  %v364_v14 = vld [vmem:[%s315_s6] sm:$0xff] }
  0x68   : > { %768 = vmatprep.subr.mxu1 %v1101_v0  ;;  %770 = vmatprep.mubr.msk.f32.mxu1 %vm1102_vm0, %v1101_v0  ;;  %s360_s25 = scalar_lea.vmem [#allocation11], %s1292_s29  ;;  %s755_s7 = sshll.u32 %s1087_s21, 7 }
  0x69   : > { %764 = vmatpush3.xpose.msk.msra.mxu0 %vm366_vm1, %v363_v1  ;;  %769 = vmatpush3.msra.mxu1 %v364_v14  ;;  %s562_s16 = scalar_lea.hbm %s1397_s5, %s755_s7  ;;  %s564_s17 = sshll.u32 %s360_s25, 4  ;;  %s565_s17 = int_to_ptr.vmem [resolvable:$true] %s564_s17 }
  0x6a   : > { %s536_s26 = scalar_lea.sflag [#allocation12], %s1289_s28  ;;  %s977_s11 = scalar_lea.vmem %s565_s17, 128 }
  0x6b   : > { %p978_p9 = scmp.ne.s32.totalorder %s565_s17, %s977_s11  ;;  %p1423_p3 = scmp.ne.s32.totalorder %s1413_s8, 0 }
  0x6c   : > { %766 = vmatmul.mubr.msk.f32.vlgmr.msra.gmra.mxu0 %vm366_vm1, %v362_v3  ;;  %s1103_s27 = smov [#allocation11]  }
  0x6d   : > { %p979_p8 = pnand %p978_p9, %p1423_p3  ;;  %s981_s14 = sshll.u32 %s1103_s27, 4  ;;  %s982_s14 = int_to_ptr.vmem [resolvable:$false] %s981_s14 }
  0x6e   : > { %s983_s1 = scalar_lea.vmem %s982_s14, 256  ;;  %p984_p11 = scmp.lt.s32.totalorder %s565_s17, %s982_s14 }
  0x6f   : > { %p980_p5 = pneg %p979_p8  ;;  %p985_p12 = scmp.lt.s32.totalorder %s983_s1, %s977_s11 }
  0x71   : > { %p986_p13 = por %p985_p12, %p984_p11 }
  0x73   : > { %p987_p2 = pnand %p986_p13, %p980_p5 }
 0x12c   : > { %v439_v5 = vpop.f32.mrf.mxu0 }
 0x12d   : > { %v440_v6 = vadd.f32 %v439_v5, %v365_v4 }
 0x12e   : > { %v767_v7 = vpop.f32.mrf.mxu0 }
 0x12f   : > { %v444_v8 = vsel %vm443_vm2, %v440_v6, -inf }
 0x130   : > { %445 = vmax.xlane.f32.xlu0 %v444_v8 }
 0x1b9   : > { %v446_v9 = vpop.xlane.xlu0 %445 }
 0x1ba   : > { %v447_v10 = vsub.f32 %v440_v6, %v446_v9 }
 0x1bc   : > { %v448_v11 = vmul.f32 1.442695, %v447_v10 }
 0x1be   : > { %863 = vpow2.f32 %v448_v11 }
 0x1cb   : > { %v864_v12 = vpop.eup %863 }
 0x1cc   : > { %v450_v13 = vsel %vm443_vm2, %v864_v12, 0.0 }
 0x1cd   : > { %451 = vadd.xlane.f32.xlu0 %v450_v13 }
 0x256   : > { %v452_v15 = vpop.xlane.xlu0 %451 }
 0x257   : > { %865 = vrcp.f32 %v452_v15 }
 0x264   : > { %v866_v16 = vpop.eup %865 }
 0x265   : > { %v454_v17 = vmul.f32 %v866_v16, %v864_v12 }
 0x267   : > { %771 = vmatmul.mubr.msk.f32.vlgmr.msra.gmra.mxu1 %vm443_vm2, %v454_v17  ;;  %455 = vst.msk [vmem:[%s360_s25] sm:$0xff] %vm443_vm2, %v454_v17 }
 0x268   : > { %990 = shalt.err (!%p987_p2)
}
 0x269   : > { %s991_s12 = scalar_lea.hbm %s562_s16, 128  ;;  %s995_s13 = scalar_lea.hbm %s1397_s5, 256 }
 0x26a   : > { %p992_p4 = scmp.ne.s32.totalorder %s562_s16, %s991_s12  ;;  %p996_p1 = scmp.lt.s32.totalorder %s562_s16, %s1397_s5 }
 0x26b   : > { %p997_p7 = scmp.lt.s32.totalorder %s995_s13, %s991_s12 }
 0x26c   : > { %p993_p10 = pnand %p992_p4, %p1423_p3 }
 0x26d   : > { %p998_p6 = por %p997_p7, %p996_p1 }
 0x26e   : > { %p994_p0 = pneg %p993_p10 }
 0x270   : > { %p999_p9 = pnand %p998_p6, %p994_p0 }
 0x272   : > { %1002 = shalt.err (!%p999_p9)
}
 0x273   : > { %784 = dma.vmem_to_hbm [thread:$0]  (%p1423_p3), %s565_s17, 128, %s562_s16, %s536_s26  }
 0x274   : > { %s353_s25 = scalar_lea.vmem [#allocation10], %s1292_s29  ;;  %s1343_s27 = scalar_lea.hbm %s1396_s4, %s755_s7 }
 0x275   : > { %s550_s24 = sshll.u32 %s353_s25, 4  ;;  %s531_s14 = scalar_lea.sflag [#allocation4], %s1289_s28  ;;  %s1345_s24 = int_to_ptr.vmem [resolvable:$true] %s550_s24 }
 0x276   : > { %s1003_s1 = scalar_lea.vmem %s1345_s24, 128  ;;  %s1104_s21 = smov [#allocation10]  }
 0x277   : > { %p1004_p8 = scmp.ne.s32.totalorder %s1345_s24, %s1003_s1  ;;  %s1007_s29 = sshll.u32 %s1104_s21, 4  ;;  %s1008_s29 = int_to_ptr.vmem [resolvable:$false] %s1007_s29 }
 0x278   : > { %s1009_s7 = scalar_lea.vmem %s1008_s29, 256  ;;  %p1010_p12 = scmp.lt.s32.totalorder %s1345_s24, %s1008_s29 }
 0x279   : > { %p1005_p5 = pnand %p1004_p8, %p1423_p3  ;;  %p1011_p13 = scmp.lt.s32.totalorder %s1009_s7, %s1003_s1 }
 0x27b   : > { %p1006_p11 = pneg %p1005_p5  ;;  %p1012_p2 = por %p1011_p13, %p1010_p12 }
 0x27d   : > { %p1013_p4 = pnand %p1012_p2, %p1006_p11 }
 0x327   : > { %v525_v18 = vpop.f32.mrf.mxu1 }
 0x328   : > { %529 = vst.msk [vmem:[%s353_s25] sm:$0xff] %vm366_vm1, %v525_v18 }
 0x329   : > { %v772_v19 = vpop.f32.mrf.mxu1 }
 0x32a   : > { %1016 = shalt.err (!%p1013_p4)
}
 0x32b   : > { %s1017_s16 = scalar_lea.hbm %s1343_s27, 128  ;;  %s1021_s26 = scalar_lea.hbm %s1396_s4, 256 }
 0x32c   : > { %p1018_p10 = scmp.ne.s32.totalorder %s1343_s27, %s1017_s16  ;;  %p1022_p7 = scmp.lt.s32.totalorder %s1343_s27, %s1396_s4 }
 0x32d   : > { %p1023_p6 = scmp.lt.s32.totalorder %s1021_s26, %s1017_s16 }
 0x32e   : > { %p1019_p0 = pnand %p1018_p10, %p1423_p3 }
 0x32f   : > { %p1024_p9 = por %p1023_p6, %p1022_p7 }
 0x330   : > { %p1020_p1 = pneg %p1019_p0 }
 0x332   : > { %p1025_p8 = pnand %p1024_p9, %p1020_p1 }
 0x334   : > { %1028 = shalt.err (!%p1025_p8)
}
 0x335   : > { %783 = dma.vmem_to_hbm [thread:$0]  (%p1423_p3), %s1345_s24, 128, %s1343_s27, %s531_s14  }
 0x336 PF: > { %s576_s30 = sand.u32 1, %s1075_s18   ;;  %p1424_p5 = scmp.ne.s32.totalorder %s1414_s9, 0 }
 0x337   : > { %p1425_p11 = scmp.ge.s32.totalorder %s1095_s23, 2  ;;  %s577_s13 = scalar_lea.sflag [#allocation4], %s576_s30 }
 0x339   : > { %p802_p12 = pnand %p1425_p11, %p1424_p5 }
 0x33b   : > { %p803_p13 = pneg %p802_p12 }
 0x33d   : > { %1066 = dma.done.wait (%p803_p13), %s577_s13, 128  }
 0x33e   : > { %1068 = vsyncadd (%p803_p13), %s577_s13, 4294967168  ;;  %s586_s10 = scalar_lea.sflag [#allocation12], %s576_s30 }
 0x33f   : > { %1070 = dma.done.wait (%p803_p13), %s586_s10, 128  }
 0x340   : > { %1072 = vsyncadd (%p803_p13), %s586_s10, 4294967168  ;;  %s29_s23 = sadd.s32 1, %s1095_s23   ;;  %s1426_s8 = sld [smem:[#allocation20_spill]] }
 0x341   : > { %p26_p2 = scmp.ge.s32.totalorder %s29_s23, 4   ;;  %s1427_s21 = sld [smem:[#allocation18_spill]] }
 0x342   : > { %s1428_s22 = sld [smem:[#allocation19_spill]]  ;;  %s1429_s18 = smov %s1079_s19 }
 0x343   : > { %s1430_s19 = smov %s1083_s20  ;;  %28 = sbr.rel (!%p26_p2) target bundleno = 13 (0xd), region = 127 }
 0x346   : > { %s1431_s20 = smov %s1426_s8 }
 0x348   :  { %591 = vsyncpa [#allocation3], 1 }
 0x349   :  { %593 = vsyncpa [#allocation3 + $0x1], 1 }
 0x34a   :  { %594 = vsyncpa [#allocation6], 1 }
 0x34b   :  { %596 = vsyncpa [#allocation6 + $0x1], 1 }
 0x34c   :  { %597 = vsyncpa [#allocation9], 1 }
 0x34d   :  { %598 = vsyncpa [#allocation4], 1 }
 0x34e   :  { %600 = vsyncpa [#allocation4 + $0x1], 1 }
 0x34f   :  { %601 = vsyncpa [#allocation12], 1 }
 0x350   :  { %603 = vsyncpa [#allocation12 + $0x1], 1 }

</bundles_post_ra>
